<compile_context>
chip_gen: v5e
topology: v5e:2x2
jax: 0.10.0
libtpu: 0.0.40
codegen_flags: <defaults>
</compile_context>

<pallas_src>
import jax
import jax.numpy as jnp
from jax.experimental import pallas as pl
from jax.experimental.pallas import tpu as pltpu

B, S, DIN, H = 2, 100, 5, 64   # batch, seq, in-features, hidden (100*64 = 6400)
K = S * DIN                    # 500 = folded contraction length


def simple_model_kernel(x_ref, w_ref, b_ref, o_ref):
    # x_ref: (B, K) f32 in VMEM   -- flattened inputs, unpadded
    # w_ref: (1, K) f32 in VMEM   -- folded effective weight row
    # b_ref: (1, 1) f32 in SMEM   -- folded bias scalar
    # o_ref: (B, 1) f32 in VMEM
    # Pure VPU multiply + lane-axis reduce (XLU); MXU deliberately unused.
    o_ref[...] = (
        jnp.sum(x_ref[...] * w_ref[...], axis=1, keepdims=True) + b_ref[0, 0]
    )


def fold_simple_model_params(embed_w, embed_b, out_w, out_b):
    """Fold both linear layers (eval-mode dropout == identity) into one
    effective weight row (1, K) and a bias scalar (1, 1)."""
    # embed_w (H, DIN), embed_b (H,), out_w (1, S*H), out_b (1,)
    w2r = out_w.reshape(S, H)                            # (100, 64): W2[0, s*64+h]
    w_eff = jnp.einsum("hd,sh->sd", embed_w, w2r)        # (100, 5), matches x (B,S,DIN) flatten order
    b_eff = jnp.sum(embed_b[None, :] * w2r) + out_b[0]   # scalar
    return (
        w_eff.reshape(1, K).astype(jnp.float32),
        b_eff.reshape(1, 1).astype(jnp.float32),
    )


@jax.jit
def simple_model_forward(x, w_eff, b_eff):
    b = x.shape[0]
    x_flat = x.reshape(b, K)   # no padding, no augmented column

    return pl.pallas_call(
        simple_model_kernel,
        out_shape=jax.ShapeDtypeStruct((b, 1), jnp.float32),
        # Gridless call: whole problem (~6 KB) is a single full-array block.
        in_specs=[
            pl.BlockSpec(memory_space=pltpu.MemorySpace.VMEM),   # x_flat (B, K)
            pl.BlockSpec(memory_space=pltpu.MemorySpace.VMEM),   # w_eff  (1, K)
            pl.BlockSpec(memory_space=pltpu.MemorySpace.SMEM),   # b_eff  (1, 1)
        ],
        out_specs=pl.BlockSpec(memory_space=pltpu.MemorySpace.VMEM),
        cost_estimate=pl.CostEstimate(
            flops=2 * b * K,
            transcendentals=0,
            bytes_accessed=4 * (b * K + K + 1 + b),
        ),
    )(x_flat, w_eff, b_eff)


if __name__ == "__main__":
    key = jax.random.PRNGKey(0)
    k_x, k_w1, k_b1, k_w2, k_b2 = jax.random.split(key, 5)

    # Deterministic synthetic parameters in PyTorch layout.
    x = jax.random.normal(k_x, (B, S, DIN), jnp.float32)
    embed_w = jax.random.normal(k_w1, (H, DIN), jnp.float32) * 0.1      # (64, 5)
    embed_b = jax.random.normal(k_b1, (H,), jnp.float32) * 0.1          # (64,)
    out_w = jax.random.normal(k_w2, (1, S * H), jnp.float32) * 0.01     # (1, 6400)
    out_b = jax.random.normal(k_b2, (1,), jnp.float32) * 0.01           # (1,)

    # TODO(synk): training-mode dropout (p=0.5 mask + 1/(1-p) scaling) is not
    # implemented; eval-mode identity is assumed (required for the folding).
    w_eff, b_eff = fold_simple_model_params(embed_w, embed_b, out_w, out_b)

    y = simple_model_forward(x, w_eff, b_eff)
    jax.block_until_ready(y)

    # Pure-JAX reference of the original (unfolded) PyTorch forward, eval mode.
    h_ref = jnp.einsum("bsd,hd->bsh", x, embed_w) + embed_b
    y_ref = h_ref.reshape(B, S * H) @ out_w.T + out_b

    assert y.shape == (B, 1)
    assert jnp.allclose(y, y_ref, atol=1e-3, rtol=1e-3), (y, y_ref)

    print("KERNEL_OK")
</pallas_src>

<mosaic_0001>
module attributes {stable_mosaic.version = 11 : i64} {
  func.func @simple_model_kernel(%arg0: memref<2x500xf32, #tpu.memory_space<vmem>>, %arg1: memref<1x500xf32, #tpu.memory_space<vmem>>, %arg2: memref<1x1xf32, #tpu.memory_space<smem>>, %arg3: memref<2x1xf32, #tpu.memory_space<vmem>>) attributes {dimension_semantics = [], scalar_prefetch = 0 : i64, scratch_operands = 0 : i64, tpu.core_type = #tpu.core_type<tc>} {
    %c0 = arith.constant 0 : index
    %c0_0 = arith.constant 0 : index
    %0 = vector.load %arg0[%c0, %c0_0] : memref<2x500xf32, #tpu.memory_space<vmem>>, vector<2x500xf32>
    %c0_1 = arith.constant 0 : index
    %c0_2 = arith.constant 0 : index
    %1 = vector.load %arg1[%c0_1, %c0_2] : memref<1x500xf32, #tpu.memory_space<vmem>>, vector<1x500xf32>
    %2 = vector.broadcast %1 : vector<1x500xf32> to vector<2x500xf32>
    %3 = arith.mulf %0, %2 : vector<2x500xf32>
    %cst = arith.constant dense<0.000000e+00> : vector<2xf32>
    %4 = vector.multi_reduction <add>, %3, %cst [1] : vector<2x500xf32> to vector<2xf32>
    %5 = vector.shape_cast %4 : vector<2xf32> to vector<2x1xf32>
    %c0_3 = arith.constant 0 : index
    %c0_4 = arith.constant 0 : index
    %6 = memref.load %arg2[%c0_3, %c0_4] : memref<1x1xf32, #tpu.memory_space<smem>>
    %7 = vector.broadcast %6 : f32 to vector<2x1xf32>
    %8 = arith.addf %5, %7 : vector<2x1xf32>
    %c0_5 = arith.constant 0 : index
    %c0_6 = arith.constant 0 : index
    %9 = vector.load %arg3[%c0_5, %c0_6] : memref<2x1xf32, #tpu.memory_space<vmem>>, vector<2x1xf32>
    tpu.vector_store %arg3[%c0_5, %c0_6], %8 {strides = array<i32>} : memref<2x1xf32, #tpu.memory_space<vmem>>, vector<2x1xf32>,
    return
  }
}

</mosaic_0001>

<bundles_post_ra>
// kernel: simple_model_forward.1
= control target key start
LH: loop header
LB: loop body
LE: loop exit
PB: predicated region body
PF: predicated region fallthrough
CT: control target
= control target key end

     0   :  { %vm25_vm0 = vcmask 1041408   ;;  %vm27_vm1 = vcmask 1045508   ;;  %vm29_vm2 = vcmask 1043456   ;;  %vm48_vm3 = vcmask 943104   ;;  %s98_s1 = inlined_call_operand.vmem [shape: f32[1,500], index: 1, kind: input, shape index: {}]   ;;  %s99_s0 = inlined_call_operand.vmem [shape: f32[2,500], index: 0, kind: input, shape index: {}]   ;;  %s100_s2 = inlined_call_operand.<no memory space> [shape: f32[1,1], index: 2, kind: input, shape index: {}]   ;;  %s101_s3 = inlined_call_operand.vmem [shape: f32[2,1], index: 3, kind: output, shape index: {}]  }
   0x1   :  { %v16_v0 = vld [vmem:[%s98_s1] sm:$0xf]  ;;  %v54_v24 = vstv %s100_s2  ;;  %vm56_vm4 = vcmask 1024  }
   0x2   :  { %v18_v1 = vperm.slane %v16_v0, 0  ;;  %v19_v2 = vperm.slane %v16_v0, 1  ;;  %v20_v3 = vperm.slane %v16_v0, 2  ;;  %v21_v4 = vperm.slane %v16_v0, 3  ;;  %v15_v8 = vld [vmem:[%s99_s0] sm:$0xff] }
   0x4   :  { %v22_v5 = vrot.slane %v19_v2, 6  ;;  %v23_v6 = vrot.slane %v20_v3, 4  ;;  %v24_v7 = vrot.slane %v21_v4, 2 }
   0x6   :  { %v26_v9 = vsel %vm25_vm0, %v18_v1, %v22_v5  ;;  %v28_v10 = vsel %vm27_vm1, %v23_v6, %v24_v7 }
   0x7   :  { %v30_v11 = vsel %vm29_vm2, %v26_v9, %v28_v10 }
   0x8   :  { %v32_v12 = vmul.f32 %v30_v11, %v15_v8 }
   0xa   :  { %34 = vst [vmem:[#allocation1] ss:$4 sm:$0xff] %v32_v12 }
  0x11   :  { %v35_v13 = vld.sshfl [vmem:[#allocation1] sm:$0xff pattern:$0x73625140]  ;;  %v36_v14 = vld.sshfl [vmem:[#allocation1 + $0x8] sm:$0xff pattern:$0x73625140] }
  0x12   :  { %v37_v15 = vld.sshfl [vmem:[#allocation1 + $0x10] sm:$0xff pattern:$0x73625140]  ;;  %v38_v16 = vld.sshfl [vmem:[#allocation1 + $0x18] sm:$0xff pattern:$0x73625140] }
  0x13   :  { %v43_v17 = vsel %vm25_vm0, %v35_v13, 0.0  ;;  %v44_v18 = vsel %vm25_vm0, %v36_v14, 0.0  ;;  %v46_v19 = vsel %vm25_vm0, %v37_v15, 0.0  ;;  %v49_v21 = vsel %vm48_vm3, %v38_v16, 0.0 }
  0x14   :  { %v45_v20 = vadd.f32 %v44_v18, %v43_v17 }
  0x16   :  { %v47_v22 = vadd.f32 %v46_v19, %v45_v20 }
  0x18   :  { %v50_v23 = vadd.f32 %v49_v21, %v47_v22 }
  0x1a   :  { %51 = vadd.xlane.f32.xlu0 %v50_v23 }
  0x8d   :  { %v52_v25 = vpop.xlane.xlu0 %51 }
  0x8e   :  { %v55_v26 = vadd.f32 %v54_v24, %v52_v25 }
  0x90   :  { %57 = vst.msk [vmem:[%s101_s3] sm:$0x3] %vm56_vm4, %v55_v26 }

</bundles_post_ra>
